<compile_context>
chip_gen: v7x
topology: tpu7x:2x2x1
jax: 0.10.0
libtpu: 0.0.40
codegen_flags: <defaults>
</compile_context>

<pallas_src>
import jax
import jax.numpy as jnp
from jax.experimental import pallas as pl
from jax.experimental.pallas import tpu as pltpu


def _leaky_relu(x, slope=0.2):
    return jnp.where(x > 0, x, slope * x)


def encoder_kernel(x_ref, c_ref, w1a_ref, w1b_ref, b1_ref,
                   w3_ref, b3_ref, wh_ref, bh_ref,
                   means_ref, logvars_ref):
    """One batch tile of the encoder MLP (all weights VMEM-resident)."""
    cdt = x_ref.dtype  # MXU-input dtype (bf16 by default); accumulation is f32.

    # fc1 + LeakyReLU(0.2); concat(x, c) fused algebraically into two matmuls.
    h = jnp.dot(x_ref[...], w1a_ref[...], preferred_element_type=jnp.float32)
    h = h + jnp.dot(c_ref[...], w1b_ref[...], preferred_element_type=jnp.float32)
    h = _leaky_relu(h + b1_ref[...])

    # fc3 + LeakyReLU(0.2)
    h = jnp.dot(h.astype(cdt), w3_ref[...], preferred_element_type=jnp.float32)
    h = _leaky_relu(h + b3_ref[...])

    # Fused [means | log_var] head: single MXU push, split from registers.
    out = jnp.dot(h.astype(cdt), wh_ref[...], preferred_element_type=jnp.float32)
    out = out + bh_ref[...]

    latent = means_ref.shape[-1]
    means_ref[...] = out[:, :latent].astype(means_ref.dtype)
    logvars_ref[...] = out[:, latent:].astype(logvars_ref.dtype)


def encoder_forward(x, c, params, *, compute_dtype=jnp.bfloat16, tile_b=512):
    """x: (B, feat), c: (B, latent) or None. Returns (means, log_vars) in f32."""
    if c is None:
        # fc1 already expects the full (feat+latent)-wide input in x; split it
        # algebraically so the same two-input kernel applies.
        split = max(1, x.shape[-1] // 2)
        x, c = x[:, :split], x[:, split:]

    B, feat = x.shape
    cdim = c.shape[-1]
    hidden = params["w3"].shape[0]
    two_lat = params["w3"].shape[1]
    latent = params["wm"].shape[1]

    cdt = compute_dtype
    w1 = params["w1"].astype(cdt)
    w1a, w1b = w1[:feat], w1[feat:]                       # (feat,H), (cdim,H)
    w3 = params["w3"].astype(cdt)
    wh = jnp.concatenate([params["wm"], params["wlv"]], axis=1).astype(cdt)   # (2L, 2L)
    b1 = params["b1"].astype(jnp.float32)
    b3 = params["b3"].astype(jnp.float32)
    bh = jnp.concatenate([params["bm"], params["blv"]], axis=1).astype(jnp.float32)

    xc = x.astype(cdt)
    cc = c.astype(cdt)

    # Batch tiling: whole-fit single tile for small B, otherwise pad B to a
    # multiple of tile_b (tile_b multiple of 8 keeps the (8,128) rule happy).
    if B <= tile_b:
        tb = B
        b_pad = B
    else:
        tb = tile_b
        b_pad = pl.cdiv(B, tb) * tb
        if b_pad != B:
            pad = b_pad - B
            xc = jnp.pad(xc, ((0, pad), (0, 0)))
            cc = jnp.pad(cc, ((0, pad), (0, 0)))
    grid = (b_pad // tb,)

    act = lambda d: pl.BlockSpec((tb, d), lambda i: (i, 0))       # batch-tiled
    res = lambda s: pl.BlockSpec(s, lambda i: (0, 0))             # VMEM-resident

    in_specs = [
        act(feat), act(cdim),
        res((feat, hidden)), res((cdim, hidden)), res((1, hidden)),
        res((hidden, two_lat)), res((1, two_lat)),
        res((two_lat, 2 * latent)), res((1, 2 * latent)),
    ]
    out_specs = (act(latent), act(latent))

    itemsize = jnp.dtype(cdt).itemsize
    flops = 2 * b_pad * ((feat + cdim) * hidden + hidden * two_lat
                         + two_lat * 2 * latent)
    bytes_accessed = (
        b_pad * (feat + cdim) * itemsize                      # activations in
        + ((feat + cdim) * hidden + hidden * two_lat
           + two_lat * 2 * latent) * itemsize                 # weights
        + (hidden + two_lat + 2 * latent) * 4                 # biases (f32)
        + b_pad * 2 * latent * 4                              # outputs (f32)
    )

    means, log_vars = pl.pallas_call(
        encoder_kernel,
        out_shape=(
            jax.ShapeDtypeStruct((b_pad, latent), jnp.float32),
            jax.ShapeDtypeStruct((b_pad, latent), jnp.float32),
        ),
        grid=grid,
        in_specs=in_specs,
        out_specs=out_specs,
        compiler_params=pltpu.CompilerParams(
            dimension_semantics=("parallel",),          # shards batch across TCs on v7x
            vmem_limit_bytes=32 * 1024 * 1024,          # safe on v5e/v6e/v7x
        ),
        cost_estimate=pl.CostEstimate(
            flops=flops, transcendentals=0, bytes_accessed=bytes_accessed),
    )(xc, cc, w1a, w1b, b1, w3, b3, wh, bh)

    if b_pad != B:
        means = means[:B]
        log_vars = log_vars[:B]
    return means, log_vars


def init_params(key, in_dim, hidden_dim, latent_size):
    """Matches weights_init: Linear weights ~ N(0, 0.02), biases = 0."""
    k1, k3, km, klv = jax.random.split(key, 4)
    std = 0.02
    two_lat = latent_size * 2
    return {
        "w1":  std * jax.random.normal(k1,  (in_dim, hidden_dim), jnp.float32),
        "b1":  jnp.zeros((1, hidden_dim), jnp.float32),
        "w3":  std * jax.random.normal(k3,  (hidden_dim, two_lat), jnp.float32),
        "b3":  jnp.zeros((1, two_lat), jnp.float32),
        "wm":  std * jax.random.normal(km,  (two_lat, latent_size), jnp.float32),
        "bm":  jnp.zeros((1, latent_size), jnp.float32),
        "wlv": std * jax.random.normal(klv, (two_lat, latent_size), jnp.float32),
        "blv": jnp.zeros((1, latent_size), jnp.float32),
    }


def _reference(x, c, params):
    """Pure-JAX f32 reference matching the torch module."""
    xc = jnp.concatenate([x, c], axis=-1)
    h = xc @ params["w1"] + params["b1"]
    h = jnp.where(h > 0, h, 0.2 * h)
    h = h @ params["w3"] + params["b3"]
    h = jnp.where(h > 0, h, 0.2 * h)
    return h @ params["wm"] + params["bm"], h @ params["wlv"] + params["blv"]


if __name__ == "__main__":
    # opt.encoder_layer_sizes = [24, 32], opt.latent_size = 8
    #   -> layer_sizes[0] += latent  => fc1: 32 -> 32, fc3: 32 -> 16,
    #      linear_means / linear_log_var: 16 -> 8
    feat_dim, hidden_dim, latent_size, batch = 24, 32, 8, 4

    key = jax.random.PRNGKey(0)
    kx, kc, kp = jax.random.split(key, 3)

    x = jax.random.normal(kx, (batch, feat_dim), jnp.float32)
    c = jax.random.normal(kc, (batch, latent_size), jnp.float32)
    params = init_params(kp, feat_dim + latent_size, hidden_dim, latent_size)

    means, log_vars = encoder_forward(x, c, params)
    jax.block_until_ready((means, log_vars))

    ref_means, ref_lv = _reference(x, c, params)
    assert means.shape == (batch, latent_size) and log_vars.shape == (batch, latent_size)
    assert jnp.allclose(means, ref_means, atol=5e-3, rtol=5e-2)
    assert jnp.allclose(log_vars, ref_lv, atol=5e-3, rtol=5e-2)

    # Exercise the tiled + padded batch path (grid > 1, non-multiple batch).
    kx2, kc2 = jax.random.split(jax.random.PRNGKey(1))
    x2 = jax.random.normal(kx2, (600, feat_dim), jnp.float32)
    c2 = jax.random.normal(kc2, (600, latent_size), jnp.float32)
    m2, lv2 = encoder_forward(x2, c2, params, tile_b=256)
    jax.block_until_ready((m2, lv2))
    rm2, rlv2 = _reference(x2, c2, params)
    assert m2.shape == (600, latent_size)
    assert jnp.allclose(m2, rm2, atol=5e-3, rtol=5e-2)
    assert jnp.allclose(lv2, rlv2, atol=5e-3, rtol=5e-2)

    print("KERNEL_OK")
</pallas_src>

<mosaic_0001>
module attributes {stable_mosaic.version = 11 : i64} {
  func.func @encoder_kernel(%arg0: i32, %arg1: memref<4x24xbf16, #tpu.memory_space<vmem>>, %arg2: memref<4x8xbf16, #tpu.memory_space<vmem>>, %arg3: memref<24x32xbf16, #tpu.memory_space<vmem>>, %arg4: memref<8x32xbf16, #tpu.memory_space<vmem>>, %arg5: memref<1x32xf32, #tpu.memory_space<vmem>>, %arg6: memref<32x16xbf16, #tpu.memory_space<vmem>>, %arg7: memref<1x16xf32, #tpu.memory_space<vmem>>, %arg8: memref<16x16xbf16, #tpu.memory_space<vmem>>, %arg9: memref<1x16xf32, #tpu.memory_space<vmem>>, %arg10: memref<4x8xf32, #tpu.memory_space<vmem>>, %arg11: memref<4x8xf32, #tpu.memory_space<vmem>>) attributes {dimension_semantics = [#tpu.dimension_semantics<parallel>], iteration_bounds = array<i64: 1>, scalar_prefetch = 0 : i64, scratch_operands = 0 : i64, tpu.core_type = #tpu.core_type<tc>, window_params = [{transform_indices = @transform_0, window_bounds = array<i64: 4, 24>}, {transform_indices = @transform_1, window_bounds = array<i64: 4, 8>}, {pipeline_mode = #tpu.pipeline_mode<synchronous>, transform_indices = @transform_2, window_bounds = array<i64: 24, 32>}, {pipeline_mode = #tpu.pipeline_mode<synchronous>, transform_indices = @transform_3, window_bounds = array<i64: 8, 32>}, {pipeline_mode = #tpu.pipeline_mode<synchronous>, transform_indices = @transform_4, window_bounds = array<i64: 1, 32>}, {pipeline_mode = #tpu.pipeline_mode<synchronous>, transform_indices = @transform_5, window_bounds = array<i64: 32, 16>}, {pipeline_mode = #tpu.pipeline_mode<synchronous>, transform_indices = @transform_6, window_bounds = array<i64: 1, 16>}, {pipeline_mode = #tpu.pipeline_mode<synchronous>, transform_indices = @transform_7, window_bounds = array<i64: 16, 16>}, {pipeline_mode = #tpu.pipeline_mode<synchronous>, transform_indices = @transform_8, window_bounds = array<i64: 1, 16>}, {transform_indices = @transform_9, window_bounds = array<i64: 4, 8>}, {transform_indices = @transform_10, window_bounds = array<i64: 4, 8>}]} {
    %c0 = arith.constant 0 : index
    %c0_0 = arith.constant 0 : index
    %0 = vector.load %arg1[%c0, %c0_0] : memref<4x24xbf16, #tpu.memory_space<vmem>>, vector<4x24xbf16>
    %c0_1 = arith.constant 0 : index
    %c0_2 = arith.constant 0 : index
    %1 = vector.load %arg3[%c0_1, %c0_2] : memref<24x32xbf16, #tpu.memory_space<vmem>>, vector<24x32xbf16>
    %cst = arith.constant dense<0.000000e+00> : vector<4x32xf32>
    %2 = tpu.matmul %0, %1, %cst {dimension_numbers = #tpu.dot_dimension_numbers<[1], [0], [0], [1], [0, 0, 1, 1], [], []>} : vector<4x24xbf16>, vector<24x32xbf16>, vector<4x32xf32> -> vector<4x32xf32>
    %c0_3 = arith.constant 0 : index
    %c0_4 = arith.constant 0 : index
    %3 = vector.load %arg2[%c0_3, %c0_4] : memref<4x8xbf16, #tpu.memory_space<vmem>>, vector<4x8xbf16>
    %c0_5 = arith.constant 0 : index
    %c0_6 = arith.constant 0 : index
    %4 = vector.load %arg4[%c0_5, %c0_6] : memref<8x32xbf16, #tpu.memory_space<vmem>>, vector<8x32xbf16>
    %cst_7 = arith.constant dense<0.000000e+00> : vector<4x32xf32>
    %5 = tpu.matmul %3, %4, %cst_7 {dimension_numbers = #tpu.dot_dimension_numbers<[1], [0], [0], [1], [0, 0, 1, 1], [], []>} : vector<4x8xbf16>, vector<8x32xbf16>, vector<4x32xf32> -> vector<4x32xf32>
    %6 = arith.addf %2, %5 : vector<4x32xf32>
    %c0_8 = arith.constant 0 : index
    %c0_9 = arith.constant 0 : index
    %7 = vector.load %arg5[%c0_8, %c0_9] : memref<1x32xf32, #tpu.memory_space<vmem>>, vector<1x32xf32>
    %8 = vector.broadcast %7 : vector<1x32xf32> to vector<4x32xf32>
    %9 = arith.addf %6, %8 : vector<4x32xf32>
    %cst_10 = arith.constant 0.000000e+00 : f32
    %10 = vector.broadcast %cst_10 : f32 to vector<4x32xf32>
    %11 = arith.cmpf ogt, %9, %10 : vector<4x32xf32>
    %cst_11 = arith.constant 2.000000e-01 : f32
    %12 = vector.broadcast %cst_11 : f32 to vector<4x32xf32>
    %13 = arith.mulf %12, %9 : vector<4x32xf32>
    %14 = arith.select %11, %9, %13 : vector<4x32xi1>, vector<4x32xf32>
    %15 = arith.truncf %14 : vector<4x32xf32> to vector<4x32xbf16>
    %c0_12 = arith.constant 0 : index
    %c0_13 = arith.constant 0 : index
    %16 = vector.load %arg6[%c0_12, %c0_13] : memref<32x16xbf16, #tpu.memory_space<vmem>>, vector<32x16xbf16>
    %cst_14 = arith.constant dense<0.000000e+00> : vector<4x16xf32>
    %17 = tpu.matmul %15, %16, %cst_14 {dimension_numbers = #tpu.dot_dimension_numbers<[1], [0], [0], [1], [0, 0, 1, 1], [], []>} : vector<4x32xbf16>, vector<32x16xbf16>, vector<4x16xf32> -> vector<4x16xf32>
    %c0_15 = arith.constant 0 : index
    %c0_16 = arith.constant 0 : index
    %18 = vector.load %arg7[%c0_15, %c0_16] : memref<1x16xf32, #tpu.memory_space<vmem>>, vector<1x16xf32>
    %19 = vector.broadcast %18 : vector<1x16xf32> to vector<4x16xf32>
    %20 = arith.addf %17, %19 : vector<4x16xf32>
    %cst_17 = arith.constant 0.000000e+00 : f32
    %21 = vector.broadcast %cst_17 : f32 to vector<4x16xf32>
    %22 = arith.cmpf ogt, %20, %21 : vector<4x16xf32>
    %cst_18 = arith.constant 2.000000e-01 : f32
    %23 = vector.broadcast %cst_18 : f32 to vector<4x16xf32>
    %24 = arith.mulf %23, %20 : vector<4x16xf32>
    %25 = arith.select %22, %20, %24 : vector<4x16xi1>, vector<4x16xf32>
    %26 = arith.truncf %25 : vector<4x16xf32> to vector<4x16xbf16>
    %c0_19 = arith.constant 0 : index
    %c0_20 = arith.constant 0 : index
    %27 = vector.load %arg8[%c0_19, %c0_20] : memref<16x16xbf16, #tpu.memory_space<vmem>>, vector<16x16xbf16>
    %cst_21 = arith.constant dense<0.000000e+00> : vector<4x16xf32>
    %28 = tpu.matmul %26, %27, %cst_21 {dimension_numbers = #tpu.dot_dimension_numbers<[1], [0], [0], [1], [0, 0, 1, 1], [], []>} : vector<4x16xbf16>, vector<16x16xbf16>, vector<4x16xf32> -> vector<4x16xf32>
    %c0_22 = arith.constant 0 : index
    %c0_23 = arith.constant 0 : index
    %29 = vector.load %arg9[%c0_22, %c0_23] : memref<1x16xf32, #tpu.memory_space<vmem>>, vector<1x16xf32>
    %30 = vector.broadcast %29 : vector<1x16xf32> to vector<4x16xf32>
    %31 = arith.addf %28, %30 : vector<4x16xf32>
    %32 = vector.extract_strided_slice %31 {offsets = [0, 0], sizes = [4, 8], strides = [1, 1]} : vector<4x16xf32> to vector<4x8xf32>
    %c0_24 = arith.constant 0 : index
    %c0_25 = arith.constant 0 : index
    %33 = vector.load %arg10[%c0_24, %c0_25] : memref<4x8xf32, #tpu.memory_space<vmem>>, vector<4x8xf32>
    tpu.vector_store %arg10[%c0_24, %c0_25], %32 {strides = array<i32>} : memref<4x8xf32, #tpu.memory_space<vmem>>, vector<4x8xf32>,
    %34 = vector.extract_strided_slice %31 {offsets = [0, 8], sizes = [4, 8], strides = [1, 1]} : vector<4x16xf32> to vector<4x8xf32>
    %c0_26 = arith.constant 0 : index
    %c0_27 = arith.constant 0 : index
    %35 = vector.load %arg11[%c0_26, %c0_27] : memref<4x8xf32, #tpu.memory_space<vmem>>, vector<4x8xf32>
    tpu.vector_store %arg11[%c0_26, %c0_27], %34 {strides = array<i32>} : memref<4x8xf32, #tpu.memory_space<vmem>>, vector<4x8xf32>,
    return
  }
  func.func @transform_0(%arg0: i32) -> (i32, i32) {
    %c0_i32 = arith.constant 0 : i32
    %c0_i32_0 = arith.constant 0 : i32
    return %arg0, %c0_i32 : i32, i32
  }
  func.func @transform_1(%arg0: i32) -> (i32, i32) {
    %c0_i32 = arith.constant 0 : i32
    %c0_i32_0 = arith.constant 0 : i32
    return %arg0, %c0_i32 : i32, i32
  }
  func.func @transform_2(%arg0: i32) -> (i32, i32) {
    %c0_i32 = arith.constant 0 : i32
    %c0_i32_0 = arith.constant 0 : i32
    %c0_i32_1 = arith.constant 0 : i32
    return %c0_i32, %c0_i32_0 : i32, i32
  }
  func.func @transform_3(%arg0: i32) -> (i32, i32) {
    %c0_i32 = arith.constant 0 : i32
    %c0_i32_0 = arith.constant 0 : i32
    %c0_i32_1 = arith.constant 0 : i32
    return %c0_i32, %c0_i32_0 : i32, i32
  }
  func.func @transform_4(%arg0: i32) -> (i32, i32) {
    %c0_i32 = arith.constant 0 : i32
    %c0_i32_0 = arith.constant 0 : i32
    %c0_i32_1 = arith.constant 0 : i32
    return %c0_i32, %c0_i32_0 : i32, i32
  }
  func.func @transform_5(%arg0: i32) -> (i32, i32) {
    %c0_i32 = arith.constant 0 : i32
    %c0_i32_0 = arith.constant 0 : i32
    %c0_i32_1 = arith.constant 0 : i32
    return %c0_i32, %c0_i32_0 : i32, i32
  }
  func.func @transform_6(%arg0: i32) -> (i32, i32) {
    %c0_i32 = arith.constant 0 : i32
    %c0_i32_0 = arith.constant 0 : i32
    %c0_i32_1 = arith.constant 0 : i32
    return %c0_i32, %c0_i32_0 : i32, i32
  }
  func.func @transform_7(%arg0: i32) -> (i32, i32) {
    %c0_i32 = arith.constant 0 : i32
    %c0_i32_0 = arith.constant 0 : i32
    %c0_i32_1 = arith.constant 0 : i32
    return %c0_i32, %c0_i32_0 : i32, i32
  }
  func.func @transform_8(%arg0: i32) -> (i32, i32) {
    %c0_i32 = arith.constant 0 : i32
    %c0_i32_0 = arith.constant 0 : i32
    %c0_i32_1 = arith.constant 0 : i32
    return %c0_i32, %c0_i32_0 : i32, i32
  }
  func.func @transform_9(%arg0: i32) -> (i32, i32) {
    %c0_i32 = arith.constant 0 : i32
    %c0_i32_0 = arith.constant 0 : i32
    return %arg0, %c0_i32 : i32, i32
  }
  func.func @transform_10(%arg0: i32) -> (i32, i32) {
    %c0_i32 = arith.constant 0 : i32
    %c0_i32_0 = arith.constant 0 : i32
    return %arg0, %c0_i32 : i32, i32
  }
}

</mosaic_0001>

<bundles_post_ra>
// kernel: tpu_custom_call.1
= control target key start
LH: loop header
LB: loop body
LE: loop exit
PB: predicated region body
PF: predicated region fallthrough
CT: control target
= control target key end

     0   :  { %16 = vsyncpa [#allocation3], 0  ;;  %s603_s0 = inlined_call_operand.hbm [shape: bf16[4,24], index: 0, kind: input, shape index: {}]   ;;  %s604_s1 = inlined_call_operand.vmem [shape: bf16[4,8], index: 1, kind: input, shape index: {}]   ;;  %s605_s2 = inlined_call_operand.vmem [shape: bf16[24,32], index: 2, kind: input, shape index: {}]   ;;  %s606_s3 = inlined_call_operand.vmem [shape: bf16[8,32], index: 3, kind: input, shape index: {}]   ;;  %s607_s4 = inlined_call_operand.vmem [shape: f32[1,32], index: 4, kind: input, shape index: {}]   ;;  %s608_s5 = inlined_call_operand.vmem [shape: bf16[32,16], index: 5, kind: input, shape index: {}]   ;;  %s609_s6 = inlined_call_operand.vmem [shape: f32[1,16], index: 6, kind: input, shape index: {}]   ;;  %s610_s7 = inlined_call_operand.vmem [shape: bf16[16,16], index: 7, kind: input, shape index: {}]   ;;  %s611_s8 = inlined_call_operand.vmem [shape: f32[1,16], index: 8, kind: input, shape index: {}]   ;;  %s612_s9 = inlined_call_operand.hbm [shape: f32[4,8], index: 9, kind: output, shape index: {0}]   ;;  %s613_s10 = inlined_call_operand.hbm [shape: f32[4,8], index: 10, kind: output, shape index: {1}]  }
   0x1   :  { %17 = vsyncpa [#allocation4], 0 }
   0x2   :  { %18 = vsyncpa [#allocation7], 0  ;;  %s470_s13 = smov [#allocation2]   ;;  %s398_s17 = scalar_lea.hbm %s603_s0, 32 }
   0x3   :  { %s25_s14 = sshll.u32 %s470_s13, 4  ;;  %p399_p0 = scmp.ne.s32.totalorder %s603_s0, %s398_s17  ;;  %s26_s14 = int_to_ptr.vmem [resolvable:$true] %s25_s14 }
   0x4   :  { %p402_p1 = scmp.lt.u32.totalorder %s398_s17, %s603_s0 }
   0x6   :  { %p404_p2 = pnand %p402_p1, %p399_p0 }
   0x8   :  { %407 = shalt.err (!%p404_p2)
}
   0x9   :  { %s408_s22 = scalar_lea.vmem %s26_s14, 32  ;;  %p413_p4 = scmp.lt.s32.totalorder %s26_s14, %s26_s14 }
   0xa   :  { %p409_p3 = scmp.ne.s32.totalorder %s26_s14, %s408_s22  ;;  %p414_p5 = scmp.lt.s32.totalorder %s408_s22, %s408_s22 }
   0xc   :  { %p415_p6 = por %p414_p5, %p413_p4 }
   0xe   :  { %p416_p7 = pnand %p415_p6, %p409_p3 }
  0x10   :  { %419 = shalt.err (!%p416_p7)
}
  0x11   :  { %28 = dma.hbm_to_vmem [thread:$0]  %s603_s0, 32, %s26_s14, [#allocation3]  }
  0x12   :  { %464 = dma.done.wait [#allocation3], 32  }
  0x13   :  { %465 = vsyncadd [#allocation3], 4294967264  ;;  %v471_v0 = vmov 0.0   ;;  %vm472_vm0 = vmmov 0   ;;  %vm59_vm1 = vcmask 1043456   ;;  %v393_v1 = vld [vmem:[%s605_s2] sm:$0xff]  }
  0x14   :  { %365 = vmatprep.subr.bf16.mxu1 %v471_v0  ;;  %359 = vmatprep.subr.bf16.mxu0 %v471_v0  ;;  %v54_v2 = vld [vmem:[%s606_s3] sm:$0xf]  ;;  %vm55_vm2 = vcmask 64512   ;;  %v394_v5 = vld [vmem:[%s605_s2 + $0x8] ss:$0 sps:$4 sm:$0xff]   ;;  %vm112_vm3 = vcmask 195584  }
  0x15   :  { %361 = vmatprep.mubr.msk.bf16.mxu0 %vm472_vm0, %v471_v0  ;;  %369 = vmatprep.mubr.msk.bf16.mxu1 %vm472_vm0, %v471_v0  ;;  %v61_v3 = vsel %vm59_vm1, %v54_v2, 0  ;;  %v53_v4 = vld [vmem:[%s604_s1] sm:$0x3]  ;;  %v117_v6 = vsel %vm59_vm1, %v394_v5, 0  ;;  %v396_v9 = vld [vmem:[%s608_s5 + $0x8] sm:$0xff]   ;;  %vm194_vm5 = vcmask 261120  }
  0x16   :  { %366 = vmatpush3.bf16.msra.mxu1 %v393_v1  ;;  %360 = vmatpush3.bf16.msra.mxu0 %v61_v3  ;;  %v49_v7 = vld [vmem:[#allocation2] sm:$0x3]  ;;  %vm257_vm7 = vcmask 130048   ;;  %vm301_vm8 = vcmask 60416  }
  0x17   :  { %367 = vmatprep.subr.bf16.mxu1 %v471_v0  ;;  %373 = vmatprep.subr.bf16.mxu0 %v471_v0  ;;  %v395_v8 = vld [vmem:[%s608_s5] sm:$0xff]  }
  0x18   :  { %v341_v15 = vld [vmem:[%s607_s4] ss:$0 sm:$0xff] }
  0x19   :  { %362 = vmatmul.mubr.msk.bf16.vlgmr.msra.gmra.mrb[0].mxu0 %vm55_vm2, %v53_v4  ;;  %v397_v24 = vld [vmem:[%s610_s7] sm:$0xff]   ;;  %s473_s7 = smov [#allocation5]  }
  0x1a   :  { %368 = vmatpush3.bf16.msra.mxu1 %v117_v6  ;;  %377 = vmatprep.mubr.msk.bf16.mxu0 %vm472_vm0, %v471_v0  ;;  %v342_v25 = vld [vmem:[%s609_s6] ss:$0 sm:$0xff]  ;;  %s314_s19 = sshll.u32 %s473_s7, 4  ;;  %s474_s6 = smov 120   ;;  %s315_s19 = int_to_ptr.vmem [resolvable:$true] %s314_s19 }
  0x1b   :  { %381 = vmatprep.subr.bf16.mxu1 %v471_v0  ;;  %374 = vmatpush3.bf16.msra.mxu0 %v395_v8  ;;  %v346_v34 = vld [vmem:[%s611_s8] ss:$0 sm:$0xff]  ;;  %s420_s20 = scalar_lea.vmem %s315_s19, 64  ;;  %p425_p9 = scmp.lt.s32.totalorder %s315_s19, %s315_s19 }
  0x1c   :  { %375 = vmatprep.subr.bf16.mxu0 %v471_v0  ;;  %p421_p8 = scmp.ne.s32.totalorder %s315_s19, %s420_s20  ;;  %p426_p10 = scmp.lt.s32.totalorder %s420_s20, %s420_s20 }
  0x1d   :  { %370 = vmatmul.mubr.msk.bf16.vlgmr.msra.gmra.mrb[0].mxu1 %vm112_vm3, %v49_v7 }
  0x1e   :  { %383 = vmatprep.mubr.msk.bf16.mxu1 %vm472_vm0, %v471_v0  ;;  %382 = vmatpush3.bf16.msra.mxu1 %v397_v24  ;;  %p427_p11 = por %p426_p10, %p425_p9 }
  0x1f   :  { %376 = vmatpush3.bf16.msra.mxu0 %v396_v9 }
  0x20   :  { %p428_p12 = pnand %p427_p11, %p421_p8 }
  0xec   :  { %v97_v10 = vpop.f32.mrb[0].mxu0 }
  0xed   :  { %v363_v11 = vpop.f32.mrb[1].mxu0 }
  0xee   :  { %v100_v12 = vpop.f32.mrb[2].mxu0 }
  0xef   :  { %v364_v13 = vpop.f32.mrb[3].mxu0 }
  0xf0   :  { %v153_v14 = vpop.f32.mrb[0].mxu1 }
  0xf1   :  { %v154_v16 = vadd.f32 %v153_v14, %v97_v10  ;;  %v371_v17 = vpop.f32.mrb[1].mxu1 }
  0xf2   :  { %v156_v18 = vpop.f32.mrb[2].mxu1 }
  0xf3   :  { %v166_v19 = vadd.f32 %v341_v15, %v154_v16  ;;  %v372_v20 = vpop.f32.mrb[3].mxu1 }
  0xf5   :  { %vm167_vm4 = vcmp.gt.f32.partialorder %v166_v19, 0.0  ;;  %v168_v21 = vmul.f32 0.2, %v166_v19 }
  0xf7   :  { %v169_v22 = vsel %vm167_vm4, %v166_v19, %v168_v21 }
  0xf8   :  { %v170_v23 = vpack.c.bf16 %v169_v22, %v169_v22 }
  0xfa   :  { %378 = vmatmul.mubr.msk.bf16.vlgmr.msra.gmra.mrb[4].mxu0 %vm194_vm5, %v170_v23 }
 0x1cd   :  { %v232_v26 = vpop.f32.mrb[4].mxu0 }
 0x1ce   :  { %v233_v27 = vadd.f32 %v342_v25, %v232_v26  ;;  %v379_v28 = vpop.f32.mrb[5].mxu0 }
 0x1cf   :  { %v235_v29 = vpop.f32.mrb[6].mxu0 }
 0x1d0   :  { %vm238_vm6 = vcmp.gt.f32.partialorder %v233_v27, 0.0  ;;  %v239_v30 = vmul.f32 0.2, %v233_v27  ;;  %v380_v31 = vpop.f32.mrb[7].mxu0 }
 0x1d2   :  { %v240_v32 = vsel %vm238_vm6, %v233_v27, %v239_v30 }
 0x1d3   :  { %v241_v33 = vpack.c.bf16 %v240_v32, %v240_v32 }
 0x1d5   :  { %384 = vmatmul.mubr.msk.bf16.vlgmr.msra.gmra.mrb[4].mxu1 %vm257_vm7, %v241_v33 }
 0x2a8   :  { %v295_v35 = vpop.f32.mrb[4].mxu1 }
 0x2a9   :  { %v296_v36 = vadd.f32 %v346_v34, %v295_v35  ;;  %v385_v37 = vpop.f32.mrb[5].mxu1 }
 0x2aa   :  { %v298_v38 = vpop.f32.mrb[6].mxu1 }
 0x2ab   :  { %v386_v39 = vpop.f32.mrb[7].mxu1  ;;  %304 = vrot.lane.b32.xlu0 %v296_v36, %s474_s6  ;;  %302 = vst.msk [vmem:[#allocation5] sm:$0xf] %vm301_vm8, %v296_v36 }
 0x2ac   :  { %431 = shalt.err (!%p428_p12)
}
 0x2ad   :  { %s432_s22 = scalar_lea.hbm %s612_s9, 64 }
 0x2ae   :  { %p433_p13 = scmp.ne.s32.totalorder %s612_s9, %s432_s22  ;;  %p436_p0 = scmp.lt.u32.totalorder %s432_s22, %s612_s9 }
 0x2b0   :  { %p438_p1 = pnand %p436_p0, %p433_p13 }
 0x2b2   :  { %441 = shalt.err (!%p438_p1)
}
 0x2b3   :  { %317 = dma.vmem_to_hbm [thread:$0]  %s315_s19, 64, %s612_s9, [#allocation4]  }
 0x2b4   :  { %s475_s0 = smov [#allocation6]  }
 0x2b5   :  { %s324_s29 = sshll.u32 %s475_s0, 4  ;;  %s325_s29 = int_to_ptr.vmem [resolvable:$true] %s324_s29 }
 0x2b6   :  { %s442_s30 = scalar_lea.vmem %s325_s29, 64  ;;  %p447_p3 = scmp.lt.s32.totalorder %s325_s29, %s325_s29 }
 0x2b7   :  { %p443_p2 = scmp.ne.s32.totalorder %s325_s29, %s442_s30  ;;  %p448_p4 = scmp.lt.s32.totalorder %s442_s30, %s442_s30 }
 0x2b9   :  { %p449_p5 = por %p448_p4, %p447_p3 }
 0x2bb   :  { %p450_p6 = pnand %p449_p5, %p443_p2 }
 0x31d   :  { %v305_v40 = vpop.permute.xlu0 %304 }
 0x31e   :  { %307 = vst.msk [vmem:[#allocation6] sm:$0xf] %vm301_vm8, %v305_v40 }
 0x31f   :  { %453 = shalt.err (!%p450_p6)
}
 0x320   :  { %s454_s3 = scalar_lea.hbm %s613_s10, 64 }
 0x321   :  { %p455_p7 = scmp.ne.s32.totalorder %s613_s10, %s454_s3  ;;  %p458_p8 = scmp.lt.u32.totalorder %s454_s3, %s613_s10 }
 0x323   :  { %p460_p9 = pnand %p458_p8, %p455_p7 }
 0x325   :  { %463 = shalt.err (!%p460_p9)
}
 0x326   :  { %327 = dma.vmem_to_hbm [thread:$0]  %s325_s29, 64, %s613_s10, [#allocation7]  }
 0x327   :  { %466 = dma.done.wait [#allocation4], 64  }
 0x328   :  { %467 = vsyncadd [#allocation4], 4294967232 }
 0x329   :  { %468 = dma.done.wait [#allocation7], 64  }
 0x32a   :  { %469 = vsyncadd [#allocation7], 4294967232 }
 0x32b   :  { %334 = vsyncpa [#allocation3], 1 }
 0x32c   :  { %335 = vsyncpa [#allocation4], 1 }
 0x32d   :  { %336 = vsyncpa [#allocation7], 1 }

</bundles_post_ra>
